<compile_context>
chip_gen: v7x
topology: tpu7x:2x2x1
jax: 0.10.0
libtpu: 0.0.40
codegen_flags: <defaults>
</compile_context>

<pallas_src>
import functools
import math

import jax
import jax.numpy as jnp
from jax.experimental import pallas as pl
from jax.experimental.pallas import tpu as pltpu

LANE = 128
SUBLANE = 8


def _cdiv(a, b):
    return (a + b - 1) // b


def _round_up(a, b):
    return _cdiv(a, b) * b


# ---------------------------------------------------------------------------
# Pallas kernel: per-row (row = one (batch, channel) pair) spatial reduction.
#   out_ref / tgt_ref : (R_blk, TK) tile of the flattened (B*C, H*W) tensors
#   stats_ref         : (R_blk, 2)  -> col 0 = huber mean, col 1 = l2 mean
#   sqrt_acc / sq_acc : (R_blk, 1)  VMEM accumulators across the spatial grid axis
# ---------------------------------------------------------------------------
def huber_l2_stats_kernel(out_ref, tgt_ref, stats_ref, sqrt_acc, sq_acc,
                          *, huber_c, hw, tk, ragged):
    k = pl.program_id(1)

    @pl.when(k == 0)
    def _():
        sqrt_acc[...] = jnp.zeros_like(sqrt_acc)
        sq_acc[...] = jnp.zeros_like(sq_acc)

    # Native-dtype DMA; widen to f32 immediately so all math is f32 (v5e has no
    # bf16 VPU/EUP paths).
    diff = out_ref[...].astype(jnp.float32) - tgt_ref[...].astype(jnp.float32)
    sq = diff * diff
    sqrt_t = jnp.sqrt(sq + huber_c * huber_c)

    if ragged:
        # Ragged last spatial tile: mask out-of-bounds lanes in-kernel instead
        # of padding the inputs in HBM.  For non-last tiles the mask is all-true.
        lane = jax.lax.broadcasted_iota(jnp.int32, (1, tk), 1)
        valid = (k * tk + lane) < hw
        sq = jnp.where(valid, sq, 0.0)
        sqrt_t = jnp.where(valid, sqrt_t, 0.0)

    sqrt_acc[...] += jnp.sum(sqrt_t, axis=-1, keepdims=True)
    sq_acc[...] += jnp.sum(sq, axis=-1, keepdims=True)

    @pl.when(k == pl.num_programs(1) - 1)
    def _():
        inv_hw = 1.0 / float(hw)
        hub = (2.0 * huber_c) * (sqrt_acc[...] * inv_hw - huber_c)   # (R_blk, 1)
        l2 = sq_acc[...] * inv_hw                                    # (R_blk, 1)
        col = jax.lax.broadcasted_iota(jnp.int32, stats_ref.shape, 1)
        stats_ref[...] = jnp.where(col == 0, hub, l2)                # (R_blk, 2)


# ---------------------------------------------------------------------------
# Forward pass.
# ---------------------------------------------------------------------------
def adaptive_loss_forward(output, target, params, *, d_model=32, num_heads=4,
                          huber_c=0.3, block_bytes=4 * 1024 * 1024):
    wq, bq, wk, bk, wv, bv, wo, bo, wl, bl = params
    B, C, H, W = output.shape
    HW = H * W
    R = B * C
    depth = d_model // num_heads
    itemsize = jnp.dtype(output.dtype).itemsize

    # ---- Stage 1: HBM-bound spatial reduction (Pallas) ----------------------
    out2 = output.reshape(R, HW)      # contiguous reshape: no copy, native dtype
    tgt2 = target.reshape(R, HW)

    # Lane tile: the whole spatial extent if it fits the per-block budget,
    # otherwise a large 128-multiple tile (ragged tail masked in-kernel).
    lane_budget = max(LANE, (block_bytes // (SUBLANE * itemsize)) // LANE * LANE)
    TK = HW if HW <= lane_budget else lane_budget
    nk = _cdiv(HW, TK)
    ragged = (HW % TK) != 0

    # Row tile: fold all B*C rows so the 8 f32 sublanes are filled even when
    # C < 8; for larger B*C keep >= 2 row blocks (both v7x TensorCores busy).
    if R <= SUBLANE:
        R_blk = R
    else:
        rows_budget = max(SUBLANE,
                          (block_bytes // (TK * itemsize)) // SUBLANE * SUBLANE)
        R_blk = min(rows_budget, _round_up(_cdiv(R, 2), SUBLANE))
    nr = _cdiv(R, R_blk)

    kernel = functools.partial(huber_l2_stats_kernel, huber_c=float(huber_c),
                               hw=HW, tk=TK, ragged=ragged)

    # Default double-buffering is enough: the finalize is a handful of VPU ops,
    # so there is no heavy per-batch epilogue to hide (was the Buffered(3) case).
    stats = pl.pallas_call(
        kernel,
        grid=(nr, nk),
        in_specs=[pl.BlockSpec((R_blk, TK), lambda r, k: (r, k)),
                  pl.BlockSpec((R_blk, TK), lambda r, k: (r, k))],
        out_specs=pl.BlockSpec((R_blk, 2), lambda r, k: (r, 0)),
        out_shape=jax.ShapeDtypeStruct((R, 2), jnp.float32),
        scratch_shapes=[pltpu.VMEM((R_blk, 1), jnp.float32),   # sum sqrt(d^2+c^2)
                        pltpu.VMEM((R_blk, 1), jnp.float32)],  # sum d^2
        compiler_params=pltpu.CompilerParams(
            dimension_semantics=("parallel", "arbitrary"),
            # ~16 MiB actual working set; 48 MiB cap leaves headroom and is
            # still under v7x's 64 MiB physical VMEM per TensorCore.
            vmem_limit_bytes=48 * 1024 * 1024),
    )(out2, tgt2)

    # ---- Stage 2: tiny MHA gating head (XLA batched GEMMs) ------------------
    hub = stats[:, 0].reshape(B, C, 1, 1)
    l2 = stats[:, 1].reshape(B, C, 1, 1)

    comb = stats.reshape(B, C, 2)                                # [hub, l2]
    x = jnp.concatenate([comb] * (d_model // 2), axis=-1)        # (B, C, D)

    q = x @ wq + bq
    k = x @ wk + bk
    v = x @ wv + bv

    def split_heads(z):
        return z.reshape(B, C, num_heads, depth).transpose(0, 2, 1, 3)

    qh, kh, vh = split_heads(q), split_heads(k), split_heads(v)
    s = jnp.einsum('bhqd,bhkd->bhqk', qh, kh) / math.sqrt(depth)
    p = jax.nn.softmax(s, axis=-1)                               # stable softmax
    o = jnp.einsum('bhqk,bhkd->bhqd', p, vh)
    o = o.transpose(0, 2, 1, 3).reshape(B, C, d_model)
    y = o @ wo + bo
    w = jax.nn.softmax(y @ wl + bl, axis=-1)                     # (B, C, 2), stable

    hub_w = w[..., 0].reshape(B, C, 1, 1)
    l2_w = w[..., 1].reshape(B, C, 1, 1)
    return hub_w * hub + l2_w * l2


# ---------------------------------------------------------------------------
# Deterministic parameter init (PyTorch Linear-style uniform init).
# Weights stored as (in, out), biases as (1, out).
# ---------------------------------------------------------------------------
def init_params(key, d_model):
    keys = jax.random.split(key, 5)

    def lin(k, fan_in, fan_out):
        kw, kb = jax.random.split(k)
        bound = 1.0 / math.sqrt(fan_in)
        w = jax.random.uniform(kw, (fan_in, fan_out), jnp.float32, -bound, bound)
        b = jax.random.uniform(kb, (1, fan_out), jnp.float32, -bound, bound)
        return w, b

    wq, bq = lin(keys[0], d_model, d_model)
    wk, bk = lin(keys[1], d_model, d_model)
    wv, bv = lin(keys[2], d_model, d_model)
    wo, bo = lin(keys[3], d_model, d_model)
    wl, bl = lin(keys[4], d_model, 2)
    # TODO(synk): cov2half Conv2d(4, 4, k=2, s=2) is declared in the PyTorch
    # module but never used in forward(), so it is not implemented here.
    return (wq, bq, wk, bk, wv, bv, wo, bo, wl, bl)


# ---------------------------------------------------------------------------
# Pure-JAX reference (mirrors the PyTorch forward) for a correctness check.
# ---------------------------------------------------------------------------
def reference_forward(output, target, params, *, d_model=32, num_heads=4,
                      huber_c=0.3):
    wq, bq, wk, bk, wv, bv, wo, bo, wl, bl = params
    B, C, H, W = output.shape
    diff = output - target
    hub = 2.0 * huber_c * (jnp.sqrt(diff ** 2 + huber_c ** 2) - huber_c)
    hub = hub.mean(axis=(-2, -1), keepdims=True)                    # (B,C,1,1)
    l2 = (diff ** 2).mean(axis=(-2, -1), keepdims=True)             # (B,C,1,1)
    comb = jnp.stack([hub, l2], axis=-1).reshape(B, -1, 2)          # (B,C,2)
    x = jnp.concatenate([comb] * (d_model // 2), axis=-1)           # (B,C,D)

    depth = d_model // num_heads
    q, k, v = x @ wq + bq, x @ wk + bk, x @ wv + bv

    def split(z):
        return z.reshape(B, -1, num_heads, depth).transpose(0, 2, 1, 3)

    qh, kh, vh = split(q), split(k), split(v)
    s = jnp.einsum('bhqd,bhkd->bhqk', qh, kh) / math.sqrt(depth)
    p = jax.nn.softmax(s, axis=-1)
    o = jnp.einsum('bhqk,bhkd->bhqd', p, vh).transpose(0, 2, 1, 3)
    o = o.reshape(B, -1, d_model)
    y = o @ wo + bo
    sm = jax.nn.softmax(y @ wl + bl, axis=-1)                       # (B,C,2)
    hw_ = sm[..., 0].reshape(B, C, 1, 1)
    lw_ = sm[..., 1].reshape(B, C, 1, 1)
    return hw_ * hub + lw_ * l2


if __name__ == "__main__":
    D_MODEL, NUM_HEADS, HUBER_C = 32, 4, 0.3
    key = jax.random.PRNGKey(0)
    k1, k2, k3 = jax.random.split(key, 3)
    output = jax.random.normal(k1, (2, 4, 16, 16), jnp.float32)
    target = jax.random.normal(k2, (2, 4, 16, 16), jnp.float32)
    params = init_params(k3, D_MODEL)

    fwd = jax.jit(functools.partial(adaptive_loss_forward, d_model=D_MODEL,
                                    num_heads=NUM_HEADS, huber_c=HUBER_C))

    # --- check 1: f32 inputs, single-tile path ------------------------------
    result = fwd(output, target, params)
    jax.block_until_ready(result)
    ref = reference_forward(output, target, params, d_model=D_MODEL,
                            num_heads=NUM_HEADS, huber_c=HUBER_C)
    assert result.shape == (2, 4, 1, 1), result.shape
    assert bool(jnp.all(jnp.isfinite(result)))
    assert jnp.allclose(result, ref, rtol=2e-3, atol=2e-4), (
        float(jnp.max(jnp.abs(result - ref))))

    # --- check 2: native bf16 DMA path (widened in-kernel) ------------------
    out_bf = output.astype(jnp.bfloat16)
    tgt_bf = target.astype(jnp.bfloat16)
    result_bf = fwd(out_bf, tgt_bf, params)
    jax.block_until_ready(result_bf)
    ref_bf = reference_forward(out_bf.astype(jnp.float32),
                               tgt_bf.astype(jnp.float32), params,
                               d_model=D_MODEL, num_heads=NUM_HEADS,
                               huber_c=HUBER_C)
    assert jnp.allclose(result_bf, ref_bf, rtol=5e-3, atol=5e-4), (
        float(jnp.max(jnp.abs(result_bf - ref_bf))))

    # --- check 3: multi-tile spatial axis + ragged in-kernel mask -----------
    k4, k5 = jax.random.split(jax.random.PRNGKey(1))
    out_big = jax.random.normal(k4, (2, 4, 100, 100), jnp.float32)
    tgt_big = jax.random.normal(k5, (2, 4, 100, 100), jnp.float32)
    fwd_tiled = jax.jit(functools.partial(
        adaptive_loss_forward, d_model=D_MODEL, num_heads=NUM_HEADS,
        huber_c=HUBER_C, block_bytes=64 * 1024))  # tiny budget -> forces nk>1 + ragged tail
    result_big = fwd_tiled(out_big, tgt_big, params)
    jax.block_until_ready(result_big)
    ref_big = reference_forward(out_big, tgt_big, params, d_model=D_MODEL,
                                num_heads=NUM_HEADS, huber_c=HUBER_C)
    assert jnp.allclose(result_big, ref_big, rtol=2e-3, atol=2e-4), (
        float(jnp.max(jnp.abs(result_big - ref_big))))

    print("KERNEL_OK")
</pallas_src>

<mosaic_0001>
module attributes {stable_mosaic.version = 11 : i64} {
  func.func @huber_l2_stats_kernel(%arg0: i32, %arg1: i32, %arg2: memref<8x256xf32, #tpu.memory_space<vmem>>, %arg3: memref<8x256xf32, #tpu.memory_space<vmem>>, %arg4: memref<8x2xf32, #tpu.memory_space<vmem>>, %arg5: memref<8x1xf32, #tpu.memory_space<vmem>>, %arg6: memref<8x1xf32, #tpu.memory_space<vmem>>) attributes {dimension_semantics = [#tpu.dimension_semantics<parallel>, #tpu.dimension_semantics<arbitrary>], iteration_bounds = array<i64: 1, 1>, scalar_prefetch = 0 : i64, scratch_operands = 2 : i64, tpu.core_type = #tpu.core_type<tc>, window_params = [{transform_indices = @transform_0, window_bounds = array<i64: 8, 256>}, {transform_indices = @transform_1, window_bounds = array<i64: 8, 256>}, {transform_indices = @transform_2, window_bounds = array<i64: 8, 2>}]} {
    %c0_i32 = arith.constant 0 : i32
    %0 = arith.cmpi eq, %arg1, %c0_i32 : i32
    %1 = arith.extui %0 : i1 to i32
    %c0_i32_0 = arith.constant 0 : i32
    %2 = arith.cmpi ne, %1, %c0_i32_0 : i32
    scf.if %2 {
      %cst_16 = arith.constant 0.000000e+00 : f32
      %23 = vector.broadcast %cst_16 : f32 to vector<8x1xf32>
      %c0_17 = arith.constant 0 : index
      %c0_18 = arith.constant 0 : index
      %24 = vector.load %arg5[%c0_17, %c0_18] : memref<8x1xf32, #tpu.memory_space<vmem>>, vector<8x1xf32>
      tpu.vector_store %arg5[%c0_17, %c0_18], %23 {strides = array<i32>} : memref<8x1xf32, #tpu.memory_space<vmem>>, vector<8x1xf32>,
      %cst_19 = arith.constant 0.000000e+00 : f32
      %25 = vector.broadcast %cst_19 : f32 to vector<8x1xf32>
      %c0_20 = arith.constant 0 : index
      %c0_21 = arith.constant 0 : index
      %26 = vector.load %arg6[%c0_20, %c0_21] : memref<8x1xf32, #tpu.memory_space<vmem>>, vector<8x1xf32>
      tpu.vector_store %arg6[%c0_20, %c0_21], %25 {strides = array<i32>} : memref<8x1xf32, #tpu.memory_space<vmem>>, vector<8x1xf32>,
    } else {
    }
    %c0 = arith.constant 0 : index
    %c0_1 = arith.constant 0 : index
    %3 = vector.load %arg2[%c0, %c0_1] : memref<8x256xf32, #tpu.memory_space<vmem>>, vector<8x256xf32>
    %c0_2 = arith.constant 0 : index
    %c0_3 = arith.constant 0 : index
    %4 = vector.load %arg3[%c0_2, %c0_3] : memref<8x256xf32, #tpu.memory_space<vmem>>, vector<8x256xf32>
    %5 = arith.subf %3, %4 : vector<8x256xf32>
    %6 = arith.mulf %5, %5 : vector<8x256xf32>
    %cst = arith.constant 9.000000e-02 : f32
    %7 = vector.broadcast %cst : f32 to vector<8x256xf32>
    %8 = arith.addf %6, %7 : vector<8x256xf32>
    %9 = math.sqrt %8 : vector<8x256xf32>
    %c0_4 = arith.constant 0 : index
    %c0_5 = arith.constant 0 : index
    %10 = vector.load %arg5[%c0_4, %c0_5] : memref<8x1xf32, #tpu.memory_space<vmem>>, vector<8x1xf32>
    %cst_6 = arith.constant dense<0.000000e+00> : vector<8xf32>
    %11 = vector.multi_reduction <add>, %9, %cst_6 [1] : vector<8x256xf32> to vector<8xf32>
    %12 = vector.shape_cast %11 : vector<8xf32> to vector<8x1xf32>
    %13 = arith.addf %10, %12 : vector<8x1xf32>
    %c0_7 = arith.constant 0 : index
    %c0_8 = arith.constant 0 : index
    %14 = vector.load %arg5[%c0_7, %c0_8] : memref<8x1xf32, #tpu.memory_space<vmem>>, vector<8x1xf32>
    tpu.vector_store %arg5[%c0_7, %c0_8], %13 {strides = array<i32>} : memref<8x1xf32, #tpu.memory_space<vmem>>, vector<8x1xf32>,
    %c0_9 = arith.constant 0 : index
    %c0_10 = arith.constant 0 : index
    %15 = vector.load %arg6[%c0_9, %c0_10] : memref<8x1xf32, #tpu.memory_space<vmem>>, vector<8x1xf32>
    %cst_11 = arith.constant dense<0.000000e+00> : vector<8xf32>
    %16 = vector.multi_reduction <add>, %6, %cst_11 [1] : vector<8x256xf32> to vector<8xf32>
    %17 = vector.shape_cast %16 : vector<8xf32> to vector<8x1xf32>
    %18 = arith.addf %15, %17 : vector<8x1xf32>
    %c0_12 = arith.constant 0 : index
    %c0_13 = arith.constant 0 : index
    %19 = vector.load %arg6[%c0_12, %c0_13] : memref<8x1xf32, #tpu.memory_space<vmem>>, vector<8x1xf32>
    tpu.vector_store %arg6[%c0_12, %c0_13], %18 {strides = array<i32>} : memref<8x1xf32, #tpu.memory_space<vmem>>, vector<8x1xf32>,
    %c0_i32_14 = arith.constant 0 : i32
    %20 = arith.cmpi eq, %arg1, %c0_i32_14 : i32
    %21 = arith.extui %20 : i1 to i32
    %c0_i32_15 = arith.constant 0 : i32
    %22 = arith.cmpi ne, %21, %c0_i32_15 : i32
    scf.if %22 {
      %c0_16 = arith.constant 0 : index
      %c0_17 = arith.constant 0 : index
      %23 = vector.load %arg5[%c0_16, %c0_17] : memref<8x1xf32, #tpu.memory_space<vmem>>, vector<8x1xf32>
      %cst_18 = arith.constant 3.906250e-03 : f32
      %24 = vector.broadcast %cst_18 : f32 to vector<8x1xf32>
      %25 = arith.mulf %23, %24 : vector<8x1xf32>
      %cst_19 = arith.constant 3.000000e-01 : f32
      %26 = vector.broadcast %cst_19 : f32 to vector<8x1xf32>
      %27 = arith.subf %25, %26 : vector<8x1xf32>
      %cst_20 = arith.constant 6.000000e-01 : f32
      %28 = vector.broadcast %cst_20 : f32 to vector<8x1xf32>
      %29 = arith.mulf %28, %27 : vector<8x1xf32>
      %c0_21 = arith.constant 0 : index
      %c0_22 = arith.constant 0 : index
      %30 = vector.load %arg6[%c0_21, %c0_22] : memref<8x1xf32, #tpu.memory_space<vmem>>, vector<8x1xf32>
      %cst_23 = arith.constant 3.906250e-03 : f32
      %31 = vector.broadcast %cst_23 : f32 to vector<8x1xf32>
      %32 = arith.mulf %30, %31 : vector<8x1xf32>
      %33 = tpu.iota {dimensions = array<i32: 1>} : vector<8x2xi32>
      %c0_i32_24 = arith.constant 0 : i32
      %34 = vector.broadcast %c0_i32_24 : i32 to vector<8x2xi32>
      %35 = arith.cmpi eq, %33, %34 : vector<8x2xi32>
      %36 = vector.shape_cast %29 : vector<8x1xf32> to vector<8x1xf32>
      %37 = vector.broadcast %36 : vector<8x1xf32> to vector<8x2xf32>
      %38 = vector.shape_cast %32 : vector<8x1xf32> to vector<8x1xf32>
      %39 = vector.broadcast %38 : vector<8x1xf32> to vector<8x2xf32>
      %40 = arith.select %35, %37, %39 : vector<8x2xi1>, vector<8x2xf32>
      %c0_25 = arith.constant 0 : index
      %c0_26 = arith.constant 0 : index
      %41 = vector.load %arg4[%c0_25, %c0_26] : memref<8x2xf32, #tpu.memory_space<vmem>>, vector<8x2xf32>
      tpu.vector_store %arg4[%c0_25, %c0_26], %40 {strides = array<i32>} : memref<8x2xf32, #tpu.memory_space<vmem>>, vector<8x2xf32>,
    } else {
    }
    return
  }
  func.func @transform_0(%arg0: i32, %arg1: i32) -> (i32, i32) {
    %c0_i32 = arith.constant 0 : i32
    return %arg0, %arg1 : i32, i32
  }
  func.func @transform_1(%arg0: i32, %arg1: i32) -> (i32, i32) {
    %c0_i32 = arith.constant 0 : i32
    return %arg0, %arg1 : i32, i32
  }
  func.func @transform_2(%arg0: i32, %arg1: i32) -> (i32, i32) {
    %c0_i32 = arith.constant 0 : i32
    %c0_i32_0 = arith.constant 0 : i32
    return %arg0, %c0_i32 : i32, i32
  }
}

</mosaic_0001>

<bundles_post_ra>
// kernel: adaptive_loss_forward.1
= control target key start
LH: loop header
LB: loop body
LE: loop exit
PB: predicated region body
PF: predicated region fallthrough
CT: control target
= control target key end

     0   :  { %vm15_vm0 = vcmask 7168   ;;  %v93_v3 = vmov 0.0   ;;  %v94_v23 = vmov 0   ;;  %v64_v36 = vlaneseq  ;;  %s129_s0 = inlined_call_operand.vmem [shape: f32[8,256], index: 0, kind: input, shape index: {}]   ;;  %s130_s1 = inlined_call_operand.vmem [shape: f32[8,256], index: 1, kind: input, shape index: {}]   ;;  %s131_s2 = inlined_call_operand.vmem [shape: f32[8,2], index: 2, kind: output, shape index: {}]  }
   0x1   :  { %v18_v0 = vld [vmem:[%s129_s0] sm:$0xff]  ;;  %v19_v1 = vld [vmem:[%s129_s0 + $0x8] sm:$0xff]  ;;  %16 = vst.msk [vmem:[#allocation2] sm:$0xff] %vm15_vm0, %v93_v3  ;;  %17 = vst.msk [vmem:[#allocation3] sm:$0xff] %vm15_vm0, %v93_v3  ;;  %87 = vset.pattern.permute.xlu1 %v94_v23  ;;  %88 = vset.pattern.permute.xlu0 %v94_v23  ;;  %vm78_vm6 = vcmask 15360  }
   0x2   :  { %v20_v2 = vld [vmem:[%s130_s1] sm:$0xff]  ;;  %v21_v4 = vld [vmem:[%s130_s1 + $0x8] sm:$0xff]  ;;  %v65_v37 = vand.u32 127, %v64_v36 }
   0x3   :  { %v22_v5 = vsub.f32 %v18_v0, %v20_v2  ;;  %v23_v6 = vsub.f32 %v19_v1, %v21_v4 }
   0x4   :  { %vm66_vm5 = vcmp.eq.s32.totalorder %v65_v37, 0 }
   0x5   :  { %v24_v7 = vmul.f32 %v22_v5, %v22_v5  ;;  %v25_v8 = vmul.f32 %v23_v6, %v23_v6 }
   0x7   :  { %v26_v9 = vadd.f32 0.09, %v24_v7  ;;  %v27_v10 = vadd.f32 0.09, %v25_v8  ;;  %v50_v22 = vadd.f32 %v25_v8, %v24_v7 }
   0x8   :  { %v42_v24 = vld [vmem:[#allocation2] sm:$0xff]  ;;  %v49_v27 = vld [vmem:[#allocation3] sm:$0xff] }
   0x9   :  { %89 = vrsqrt.f32 %v26_v9  ;;  %vm30_vm1 = vcmp.eq.f32.partialorder %v26_v9, inf  ;;  %v33_v12 = vand.u32 2147483648, %v26_v9  ;;  %vm32_vm2 = vcmp.eq.f32.partialorder %v26_v9, 0.0 }
   0xa   :  { %91 = vrsqrt.f32 %v27_v10  ;;  %vm37_vm3 = vcmp.eq.f32.partialorder %v27_v10, inf  ;;  %v40_v15 = vand.u32 2147483648, %v27_v10  ;;  %vm39_vm4 = vcmp.eq.f32.partialorder %v27_v10, 0.0 }
  0x13   :  { %v90_v11 = vpop.eup %89 }
  0x14   :  { %v92_v13 = vpop.eup %91  ;;  %v29_v14 = vmul.f32 %v90_v11, %v26_v9 }
  0x15   :  { %v36_v16 = vmul.f32 %v92_v13, %v27_v10 }
  0x16   :  { %v31_v17 = vsel %vm30_vm1, %v26_v9, %v29_v14 }
  0x17   :  { %v34_v18 = vsel %vm32_vm2, %v33_v12, %v31_v17  ;;  %v38_v19 = vsel %vm37_vm3, %v27_v10, %v36_v16 }
  0x18   :  { %v41_v20 = vsel %vm39_vm4, %v40_v15, %v38_v19 }
  0x19   :  { %v43_v21 = vadd.f32 %v41_v20, %v34_v18 }
  0x1b   :  { %44 = vadd.xlane.f32.xlu0 %v43_v21 }
  0x1f   :  { %51 = vadd.xlane.f32.xlu0 %v50_v22 }
  0xa8   :  { %v45_v25 = vpop.xlane.xlu0 %44 }
  0xa9   :  { %v46_v26 = vadd.f32 %v45_v25, %v42_v24 }
  0xab   :  { %48 = vst.msk [vmem:[#allocation2] sm:$0xff] %vm15_vm0, %v46_v26 }
  0xac   :  { %v52_v28 = vpop.xlane.xlu0 %51 }
  0xad   :  { %v53_v29 = vadd.f32 %v52_v28, %v49_v27 }
  0xaf   :  { %54 = vst.msk [vmem:[#allocation3] sm:$0xff] %vm15_vm0, %v53_v29 }
  0xb2   :  { %v58_v30 = vld [vmem:[#allocation2] sm:$0xff] }
  0xb3   :  { %v59_v31 = vmul.f32 0.00390625, %v58_v30 }
  0xb5   :  { %v84_v32 = vadd.f32 -0.3, %v59_v31 }
  0xb6   :  { %v62_v33 = vld [vmem:[#allocation3] sm:$0xff] }
  0xb7   :  { %v61_v34 = vmul.f32 0.6, %v84_v32  ;;  %v63_v35 = vmul.f32 0.00390625, %v62_v33 }
  0xb9   :  { %69 = vperm.xlu1 %87, %v61_v34  }
  0xbd   :  { %74 = vperm.xlu1 %87, %v63_v35  }
 0x138   :  { %v70_v38 = vpop.permute.xlu1 %69 }
 0x13c   :  { %v75_v39 = vpop.permute.xlu1 %74 }
 0x13d   :  { %v77_v40 = vsel %vm66_vm5, %v70_v38, %v75_v39 }
 0x13e   :  { %79 = vst.msk [vmem:[%s131_s2] sm:$0xff] %vm78_vm6, %v77_v40 }

</bundles_post_ra>
